<compile_context>
chip_gen: v6e
topology: v6e:2x2x1
jax: 0.10.0
libtpu: 0.0.40
codegen_flags: <defaults>
</compile_context>

<pallas_src>
import math

import jax
import jax.numpy as jnp
from jax.experimental import pallas as pl
from jax.experimental.pallas import tpu as pltpu


def _round_up(x, m):
    return ((x + m - 1) // m) * m


def gcn_gemm_kernel(x_ref, w_ref, b_ref, o_ref):
    # Pure row-tiled GEMM + bias: Y = X_tile @ kron(I_G, W) + bias.
    # bf16 x bf16 on the MXU with f32 accumulation; bias added in f32.
    y = jnp.dot(x_ref[...], w_ref[...], preferred_element_type=jnp.float32)
    o_ref[...] = (y + b_ref[...]).astype(o_ref.dtype)


def gcn_layer_forward(data, adj, W, b, *, tile_g=2048,
                      compute_dtype=jnp.bfloat16, out_dtype=jnp.float32):
    B, T, N, d = data.shape
    F = W.shape[1]
    bs = B * T
    M = bs * N

    x = data.reshape(M, d).astype(jnp.float32)
    Wf = W.astype(jnp.float32)
    bf = b.astype(jnp.float32)

    # ---- PyG GCNConv normalization for bs-times-repeated (un-offset) edges ----
    A01 = (adj != 0).astype(jnp.float32)           # edge weights discarded -> 1.0
    deg = bs * jnp.sum(A01, axis=0) + 1.0          # in-degree * multiplicity + self loop
    dis = 1.0 / jnp.sqrt(deg)
    # P[i, j] = bs * A01[j, i] * dis[j] * dis[i] + delta_ij / deg[i]
    P = bs * A01.T * dis[None, :] * dis[:, None] + jnp.diag(1.0 / deg)

    # Pre-fold the graph aggregation into the input (exact: (P x0) W == P (x0 W)).
    # Tiny (N x N) @ (N x d) XLA matmul; kernel needs no tile-0 special casing.
    x = x.at[:N].set(P @ x[:N])

    # ---- lane-dense grouped layout: fold G consecutive rows into one row ----
    # G*d is a multiple of 128 (unmasked, lane-aligned loads); G*F >= 128
    # (lane-dense stores).  Keep G at the lane-density minimum (no MXU-filling).
    G = 128 // math.gcd(d, 128)
    wbytes = jnp.dtype(compute_dtype).itemsize
    while G > 1 and (G * d) * (G * F) * wbytes > (8 << 20):   # cap resident weight
        G //= 2

    Mg = pl.cdiv(M, G)                              # grouped row count

    # Grid-step count: big tiles to amortize per-step overhead, but >= 2 steps
    # (when the problem allows) so v7x megacore can shard the row axis.
    n_tiles = pl.cdiv(Mg, tile_g)
    if Mg >= 16:
        n_tiles = max(n_tiles, 2)
    tm_g = _round_up(pl.cdiv(Mg, n_tiles), 8)       # grouped-row tile (sublane-aligned)
    Mg_pad = n_tiles * tm_g
    M_pad = Mg_pad * G

    # Pad only when the tile does not split the rows exactly (no-op otherwise).
    x_pad = x if M_pad == M else jnp.pad(x, ((0, M_pad - M), (0, 0)))
    x_g = x_pad.reshape(Mg_pad, G * d).astype(compute_dtype)

    W_big = jnp.kron(jnp.eye(G, dtype=jnp.float32), Wf).astype(compute_dtype)  # (G*d, G*F)
    b_big = jnp.tile(bf.reshape(1, F), (1, G))                                  # (1, G*F) f32

    out_g = pl.pallas_call(
        gcn_gemm_kernel,
        out_shape=jax.ShapeDtypeStruct((Mg_pad, G * F), out_dtype),
        grid_spec=pltpu.PrefetchScalarGridSpec(
            num_scalar_prefetch=0,
            grid=(n_tiles,),
            in_specs=[
                pl.BlockSpec((tm_g, G * d), lambda i: (i, 0)),    # X tile (streamed)
                pl.BlockSpec((G * d, G * F), lambda i: (0, 0)),   # kron(I_G, W) (resident)
                pl.BlockSpec((1, G * F), lambda i: (0, 0)),       # bias (resident)
            ],
            out_specs=pl.BlockSpec((tm_g, G * F), lambda i: (i, 0)),
        ),
        compiler_params=pltpu.CompilerParams(
            dimension_semantics=("parallel",),
            vmem_limit_bytes=32 << 20,
        ),
    )(x_g, W_big, b_big)

    out = out_g.reshape(M_pad, F)
    if M_pad != M:                                  # padded rows are bias-only garbage
        out = out[:M]
    return out.reshape(B, T, N, F)


def gcn_layer_reference(data, adj, W, b):
    """Pure-JAX f32 reference with identical (faithful) semantics."""
    B, T, N, d = data.shape
    bs = B * T
    M = bs * N
    x = data.reshape(M, d).astype(jnp.float32)
    A01 = (adj != 0).astype(jnp.float32)
    deg = bs * jnp.sum(A01, axis=0) + 1.0
    dis = 1.0 / jnp.sqrt(deg)
    P = bs * A01.T * dis[None, :] * dis[:, None] + jnp.diag(1.0 / deg)
    Y = x @ W.astype(jnp.float32)
    out = Y.at[:N].set(P @ Y[:N]) + b.astype(jnp.float32)[None, :]
    return out.reshape(B, T, N, -1)


if __name__ == "__main__":
    B, T, N, d, F = 2, 4, 16, 8, 32

    key = jax.random.PRNGKey(0)
    k_data, k_adj, k_w, k_b = jax.random.split(key, 4)

    data = jax.random.normal(k_data, (B, T, N, d), dtype=jnp.float32)
    # Deterministic synthetic adjacency (nonzero pattern is what matters).
    adj = (jax.random.uniform(k_adj, (N, N)) > 0.5).astype(jnp.float32)
    # GCNConv params (synthetic deterministic init; nonzero bias exercises broadcast).
    W = jax.random.normal(k_w, (d, F), dtype=jnp.float32) * (1.0 / jnp.sqrt(d))
    b = jax.random.normal(k_b, (F,), dtype=jnp.float32) * 0.1

    ref = gcn_layer_reference(data, adj, W, b)

    # Exact-semantics path (f32 compute) — tight check.
    out_f32 = jax.block_until_ready(
        gcn_layer_forward(data, adj, W, b, compute_dtype=jnp.float32))
    assert out_f32.shape == (B, T, N, F)
    assert jnp.allclose(out_f32, ref, rtol=1e-4, atol=1e-4), \
        float(jnp.max(jnp.abs(out_f32 - ref)))

    # Default fast path (bf16 operands, f32 accumulate/output) — bf16 tolerance.
    out = jax.block_until_ready(gcn_layer_forward(data, adj, W, b))
    assert out.shape == (B, T, N, F)
    assert jnp.allclose(out, ref, rtol=5e-2, atol=5e-2), \
        float(jnp.max(jnp.abs(out - ref)))

    print("KERNEL_OK")
</pallas_src>

<mosaic_0001>
module attributes {stable_mosaic.version = 11 : i64} {
  func.func @gcn_gemm_kernel(%arg0: i32, %arg1: memref<8x128xf32, #tpu.memory_space<vmem>>, %arg2: memref<128x512xf32, #tpu.memory_space<vmem>>, %arg3: memref<1x512xf32, #tpu.memory_space<vmem>>, %arg4: memref<8x512xf32, #tpu.memory_space<vmem>>) attributes {dimension_semantics = [#tpu.dimension_semantics<parallel>], iteration_bounds = array<i64: 1>, scalar_prefetch = 0 : i64, scratch_operands = 0 : i64, tpu.core_type = #tpu.core_type<tc>, window_params = [{transform_indices = @transform_0, window_bounds = array<i64: 8, 128>}, {pipeline_mode = #tpu.pipeline_mode<synchronous>, transform_indices = @transform_1, window_bounds = array<i64: 128, 512>}, {pipeline_mode = #tpu.pipeline_mode<synchronous>, transform_indices = @transform_2, window_bounds = array<i64: 1, 512>}, {transform_indices = @transform_3, window_bounds = array<i64: 8, 512>}]} {
    %c0 = arith.constant 0 : index
    %c0_0 = arith.constant 0 : index
    %0 = vector.load %arg1[%c0, %c0_0] : memref<8x128xf32, #tpu.memory_space<vmem>>, vector<8x128xf32>
    %c0_1 = arith.constant 0 : index
    %c0_2 = arith.constant 0 : index
    %1 = vector.load %arg2[%c0_1, %c0_2] : memref<128x512xf32, #tpu.memory_space<vmem>>, vector<128x512xf32>
    %cst = arith.constant dense<0.000000e+00> : vector<8x512xf32>
    %2 = tpu.matmul %0, %1, %cst {dimension_numbers = #tpu.dot_dimension_numbers<[1], [0], [0], [1], [0, 0, 1, 1], [], []>} : vector<8x128xf32>, vector<128x512xf32>, vector<8x512xf32> -> vector<8x512xf32>
    %c0_3 = arith.constant 0 : index
    %c0_4 = arith.constant 0 : index
    %3 = vector.load %arg3[%c0_3, %c0_4] : memref<1x512xf32, #tpu.memory_space<vmem>>, vector<1x512xf32>
    %4 = vector.broadcast %3 : vector<1x512xf32> to vector<8x512xf32>
    %5 = arith.addf %2, %4 : vector<8x512xf32>
    %c0_5 = arith.constant 0 : index
    %c0_6 = arith.constant 0 : index
    %6 = vector.load %arg4[%c0_5, %c0_6] : memref<8x512xf32, #tpu.memory_space<vmem>>, vector<8x512xf32>
    tpu.vector_store %arg4[%c0_5, %c0_6], %5 {strides = array<i32>} : memref<8x512xf32, #tpu.memory_space<vmem>>, vector<8x512xf32>,
    return
  }
  func.func @transform_0(%arg0: i32) -> (i32, i32) {
    %c0_i32 = arith.constant 0 : i32
    %c0_i32_0 = arith.constant 0 : i32
    return %arg0, %c0_i32 : i32, i32
  }
  func.func @transform_1(%arg0: i32) -> (i32, i32) {
    %c0_i32 = arith.constant 0 : i32
    %c0_i32_0 = arith.constant 0 : i32
    %c0_i32_1 = arith.constant 0 : i32
    return %c0_i32, %c0_i32_0 : i32, i32
  }
  func.func @transform_2(%arg0: i32) -> (i32, i32) {
    %c0_i32 = arith.constant 0 : i32
    %c0_i32_0 = arith.constant 0 : i32
    %c0_i32_1 = arith.constant 0 : i32
    return %c0_i32, %c0_i32_0 : i32, i32
  }
  func.func @transform_3(%arg0: i32) -> (i32, i32) {
    %c0_i32 = arith.constant 0 : i32
    %c0_i32_0 = arith.constant 0 : i32
    return %arg0, %c0_i32 : i32, i32
  }
}

</mosaic_0001>

<bundles_post_ra>
// kernel: tpu_custom_call.1
= control target key start
LH: loop header
LB: loop body
LE: loop exit
PB: predicated region body
PF: predicated region fallthrough
CT: control target
= control target key end

     0   :  { %8 = vsyncpa [#allocation3], 0  ;;  %s433_s0 = inlined_call_operand.hbm [shape: f32[8,128], index: 0, kind: input, shape index: {}]   ;;  %s434_s1 = inlined_call_operand.hbm [shape: f32[128,512], index: 1, kind: input, shape index: {}]   ;;  %s435_s2 = inlined_call_operand.hbm [shape: f32[1,512], index: 2, kind: input, shape index: {}]   ;;  %s436_s3 = inlined_call_operand.hbm [shape: f32[8,512], index: 3, kind: output, shape index: {}]  }
   0x1   :  { %9 = vsyncpa [#allocation6], 0 }
   0x2   :  { %10 = vsyncpa [#allocation4], 0  ;;  %s394_s12 = smov [#allocation5]  }
   0x3   :  { %s26_s13 = sshll.u32 %s394_s12, 4  ;;  %s27_s13 = int_to_ptr.vmem [resolvable:$true] %s26_s13 }
   0x4   :  { %s316_s14 = scalar_lea.vmem %s27_s13, 8192  ;;  %p321_p1 = scmp.lt.s32.totalorder %s27_s13, %s27_s13 }
   0x5   :  { %p317_p0 = scmp.ne.s32.totalorder %s27_s13, %s316_s14  ;;  %p322_p2 = scmp.lt.s32.totalorder %s316_s14, %s316_s14 }
   0x7   :  { %p323_p3 = por %p322_p2, %p321_p1 }
   0x9   :  { %p324_p4 = pnand %p323_p3, %p317_p0 }
   0xb   :  { %327 = shalt.err (!%p324_p4)
}
   0xc   :  { %s395_s15 = smov 512   ;;  %s396_s16 = smov 32  }
   0xd   :  { %32 = dma.hbm_to_vmem [thread:$0]  %s434_s1, 8192, %s27_s13, [#allocation6], %s395_s15, %s395_s15, %s396_s16  }
   0xe   :  { %s397_s19 = smov [#allocation2]   ;;  %s398_s21 = smov [#allocation7]  }
   0xf   :  { %s17_s20 = sshll.u32 %s397_s19, 4  ;;  %s39_s22 = sshll.u32 %s398_s21, 4  ;;  %s18_s20 = int_to_ptr.vmem [resolvable:$true] %s17_s20  ;;  %s40_s22 = int_to_ptr.vmem [resolvable:$true] %s39_s22 }
  0x10   :  { %s336_s23 = scalar_lea.vmem %s18_s20, 128  ;;  %p341_p6 = scmp.lt.s32.totalorder %s18_s20, %s18_s20 }
  0x11   :  { %p337_p5 = scmp.ne.s32.totalorder %s18_s20, %s336_s23  ;;  %p342_p7 = scmp.lt.s32.totalorder %s336_s23, %s336_s23 }
  0x13   :  { %p343_p8 = por %p342_p7, %p341_p6 }
  0x15   :  { %p344_p9 = pnand %p343_p8, %p337_p5 }
  0x17   :  { %347 = shalt.err (!%p344_p9)
}
  0x18   :  { %20 = dma.hbm_to_vmem [thread:$0]  %s433_s0, 128, %s18_s20, [#allocation3]  }
  0x19   :  { %s356_s26 = scalar_lea.vmem %s40_s22, 64  ;;  %p361_p11 = scmp.lt.s32.totalorder %s40_s22, %s40_s22 }
  0x1a   :  { %p357_p10 = scmp.ne.s32.totalorder %s40_s22, %s356_s26  ;;  %p362_p12 = scmp.lt.s32.totalorder %s356_s26, %s356_s26 }
  0x1c   :  { %p363_p13 = por %p362_p12, %p361_p11 }
  0x1e   :  { %p364_p0 = pnand %p363_p13, %p357_p10 }
  0x20   :  { %367 = shalt.err (!%p364_p0)
}
  0x21   :  { %42 = dma.hbm_to_vmem [thread:$0]  %s435_s2, 64, %s40_s22, [#allocation6]  }
  0x22   :  { %388 = dma.done.wait [#allocation3], 128  }
  0x23   :  { %389 = vsyncadd [#allocation3], 4294967168 }
  0x24   :  { %390 = dma.done.wait [#allocation6], 8256  }
  0x25   :  { %391 = vsyncadd [#allocation6], 4294959040  ;;  %v399_v0 = vmov 0.0   ;;  %v114_v1 = vld [vmem:[#allocation5 + $0x1e8] sm:$0xff]  ;;  %v116_v2 = vld [vmem:[#allocation5 + $0x1f8] sm:$0xff]  ;;  %s400_s0 = smov [#allocation8]  }
  0x26   :  { %203 = vmatprep.mubr.f32.mxu0 %v399_v0  ;;  %274 = vmatprep.mubr.f32.mxu1 %v399_v0  ;;  %v113_v3 = vld [vmem:[#allocation5 + $0x1e0] sm:$0xff]  ;;  %v115_v4 = vld [vmem:[#allocation5 + $0x1f0] sm:$0xff]  ;;  %v110_v5 = vld [vmem:[#allocation5 + $0x1c8] sm:$0xff]  ;;  %s291_s2 = sshll.u32 %s400_s0, 4  ;;  %s292_s2 = int_to_ptr.vmem [resolvable:$true] %s291_s2 }
  0x27   :  { %139 = vmatprep.subr.mxu0 %v114_v1  ;;  %210 = vmatprep.subr.mxu1 %v116_v2  ;;  %v112_v6 = vld [vmem:[#allocation5 + $0x1d8] sm:$0xff]  ;;  %v109_v7 = vld [vmem:[#allocation5 + $0x1c0] sm:$0xff]  ;;  %v111_v8 = vld [vmem:[#allocation5 + $0x1d0] sm:$0xff]  ;;  %v119_v2 = vlaneseq  ;;  %s368_s28 = scalar_lea.vmem %s292_s2, 512  ;;  %p373_p2 = scmp.lt.s32.totalorder %s292_s2, %s292_s2 }
  0x28   :  { %140 = vmatpush1.msra.mxu0 %v113_v3  ;;  %211 = vmatpush1.msra.mxu1 %v115_v4  ;;  %v106_v9 = vld [vmem:[#allocation5 + $0x1a8] sm:$0xff]  ;;  %v108_v10 = vld [vmem:[#allocation5 + $0x1b8] sm:$0xff]  ;;  %v105_v11 = vld [vmem:[#allocation5 + $0x1a0] sm:$0xff]  ;;  %p369_p1 = scmp.ne.s32.totalorder %s292_s2, %s368_s28  ;;  %p374_p3 = scmp.lt.s32.totalorder %s368_s28, %s368_s28 }
  0x29   :  { %141 = vmatprep.subr.mxu0 %v110_v5  ;;  %212 = vmatprep.subr.mxu1 %v112_v6  ;;  %v107_v12 = vld [vmem:[#allocation5 + $0x1b0] sm:$0xff]  ;;  %v102_v13 = vld [vmem:[#allocation5 + $0x188] sm:$0xff]  ;;  %v104_v14 = vld [vmem:[#allocation5 + $0x198] sm:$0xff]  ;;  %v120_v3 = vshrl.u32 %v119_v2, 7 }
  0x2a   :  { %142 = vmatpush1.msra.mxu0 %v109_v7  ;;  %213 = vmatpush1.msra.mxu1 %v111_v8  ;;  %v101_v15 = vld [vmem:[#allocation5 + $0x180] sm:$0xff]  ;;  %v103_v16 = vld [vmem:[#allocation5 + $0x190] sm:$0xff]  ;;  %v98_v17 = vld [vmem:[#allocation5 + $0x168] sm:$0xff]  ;;  %p375_p4 = por %p374_p3, %p373_p2 }
  0x2b   :  { %143 = vmatprep.subr.mxu0 %v106_v9  ;;  %214 = vmatprep.subr.mxu1 %v108_v10  ;;  %v100_v18 = vld [vmem:[#allocation5 + $0x178] sm:$0xff]  ;;  %v97_v19 = vld [vmem:[#allocation5 + $0x160] sm:$0xff]  ;;  %v99_v20 = vld [vmem:[#allocation5 + $0x170] sm:$0xff]  ;;  %v121_v4 = vsub.s32 0, %v120_v3  ;;  %v129_v5 = vsub.s32 2, %v120_v3  ;;  %v125_v7 = vsub.s32 1, %v120_v3 }
  0x2c   :  { %144 = vmatpush1.msra.mxu0 %v105_v11  ;;  %215 = vmatpush1.msra.mxu1 %v107_v12  ;;  %v94_v21 = vld [vmem:[#allocation5 + $0x148] sm:$0xff]  ;;  %v96_v22 = vld [vmem:[#allocation5 + $0x158] sm:$0xff]  ;;  %v93_v23 = vld [vmem:[#allocation5 + $0x140] sm:$0xff]  ;;  %v133_v8 = vsub.s32 3, %v120_v3  ;;  %p376_p5 = pnand %p375_p4, %p369_p1 }
  0x2d   :  { %145 = vmatprep.subr.mxu0 %v102_v13  ;;  %216 = vmatprep.subr.mxu1 %v104_v14  ;;  %v95_v24 = vld [vmem:[#allocation5 + $0x150] sm:$0xff]  ;;  %v90_v25 = vld [vmem:[#allocation5 + $0x128] sm:$0xff]  ;;  %v92_v26 = vld [vmem:[#allocation5 + $0x138] sm:$0xff] }
  0x2e   :  { %146 = vmatpush1.msra.mxu0 %v101_v15  ;;  %217 = vmatpush1.msra.mxu1 %v103_v16  ;;  %v89_v27 = vld [vmem:[#allocation5 + $0x120] sm:$0xff]  ;;  %v91_v28 = vld [vmem:[#allocation5 + $0x130] sm:$0xff]  ;;  %v86_v29 = vld [vmem:[#allocation5 + $0x108] sm:$0xff] }
  0x2f   :  { %147 = vmatprep.subr.mxu0 %v98_v17  ;;  %218 = vmatprep.subr.mxu1 %v100_v18  ;;  %v88_v30 = vld [vmem:[#allocation5 + $0x118] sm:$0xff]  ;;  %v85_v31 = vld [vmem:[#allocation5 + $0x100] sm:$0xff]  ;;  %v87_v32 = vld [vmem:[#allocation5 + $0x110] sm:$0xff] }
  0x30   :  { %148 = vmatpush1.msra.mxu0 %v97_v19  ;;  %219 = vmatpush1.msra.mxu1 %v99_v20  ;;  %v82_v33 = vld [vmem:[#allocation5 + $0xe8] sm:$0xff]  ;;  %v84_v34 = vld [vmem:[#allocation5 + $0xf8] sm:$0xff]  ;;  %v81_v35 = vld [vmem:[#allocation5 + $0xe0] sm:$0xff] }
  0x31   :  { %149 = vmatprep.subr.mxu0 %v94_v21  ;;  %220 = vmatprep.subr.mxu1 %v96_v22  ;;  %v83_v36 = vld [vmem:[#allocation5 + $0xf0] sm:$0xff]  ;;  %v78_v37 = vld [vmem:[#allocation5 + $0xc8] sm:$0xff]  ;;  %v80_v38 = vld [vmem:[#allocation5 + $0xd8] sm:$0xff] }
  0x32   :  { %150 = vmatpush1.msra.mxu0 %v93_v23  ;;  %221 = vmatpush1.msra.mxu1 %v95_v24  ;;  %v77_v39 = vld [vmem:[#allocation5 + $0xc0] sm:$0xff]  ;;  %v79_v40 = vld [vmem:[#allocation5 + $0xd0] sm:$0xff]  ;;  %v74_v41 = vld [vmem:[#allocation5 + $0xa8] sm:$0xff] }
  0x33   :  { %151 = vmatprep.subr.mxu0 %v90_v25  ;;  %222 = vmatprep.subr.mxu1 %v92_v26  ;;  %v76_v42 = vld [vmem:[#allocation5 + $0xb8] sm:$0xff]  ;;  %v73_v43 = vld [vmem:[#allocation5 + $0xa0] sm:$0xff]  ;;  %v75_v44 = vld [vmem:[#allocation5 + $0xb0] sm:$0xff] }
  0x34   :  { %152 = vmatpush1.msra.mxu0 %v89_v27  ;;  %223 = vmatpush1.msra.mxu1 %v91_v28  ;;  %v70_v45 = vld [vmem:[#allocation5 + $0x88] sm:$0xff]  ;;  %v72_v46 = vld [vmem:[#allocation5 + $0x98] sm:$0xff]  ;;  %v69_v47 = vld [vmem:[#allocation5 + $0x80] sm:$0xff] }
  0x35   :  { %153 = vmatprep.subr.mxu0 %v86_v29  ;;  %224 = vmatprep.subr.mxu1 %v88_v30  ;;  %v71_v48 = vld [vmem:[#allocation5 + $0x90] sm:$0xff]  ;;  %v66_v49 = vld [vmem:[#allocation5 + $0x68] sm:$0xff]  ;;  %v68_v50 = vld [vmem:[#allocation5 + $0x78] sm:$0xff] }
  0x36   :  { %154 = vmatpush1.msra.mxu0 %v85_v31  ;;  %225 = vmatpush1.msra.mxu1 %v87_v32  ;;  %v65_v51 = vld [vmem:[#allocation5 + $0x60] sm:$0xff]  ;;  %v67_v52 = vld [vmem:[#allocation5 + $0x70] sm:$0xff]  ;;  %v62_v53 = vld [vmem:[#allocation5 + $0x48] sm:$0xff] }
  0x37   :  { %155 = vmatprep.subr.mxu0 %v82_v33  ;;  %226 = vmatprep.subr.mxu1 %v84_v34  ;;  %v64_v54 = vld [vmem:[#allocation5 + $0x58] sm:$0xff]  ;;  %v61_v55 = vld [vmem:[#allocation5 + $0x40] sm:$0xff]  ;;  %v63_v56 = vld [vmem:[#allocation5 + $0x50] sm:$0xff] }
  0x38   :  { %156 = vmatpush1.msra.mxu0 %v81_v35  ;;  %227 = vmatpush1.msra.mxu1 %v83_v36  ;;  %v58_v57 = vld [vmem:[#allocation5 + $0x28] sm:$0xff]  ;;  %v60_v58 = vld [vmem:[#allocation5 + $0x38] sm:$0xff]  ;;  %v57_v59 = vld [vmem:[#allocation5 + $0x20] sm:$0xff] }
  0x39   :  { %157 = vmatprep.subr.mxu0 %v78_v37  ;;  %228 = vmatprep.subr.mxu1 %v80_v38  ;;  %v59_v60 = vld [vmem:[#allocation5 + $0x30] sm:$0xff]  ;;  %v54_v61 = vld [vmem:[#allocation5 + $0x8] sm:$0xff]  ;;  %v56_v62 = vld [vmem:[#allocation5 + $0x18] sm:$0xff] }
  0x3a   :  { %158 = vmatpush1.msra.mxu0 %v77_v39  ;;  %229 = vmatpush1.msra.mxu1 %v79_v40  ;;  %v53_v63 = vld [vmem:[#allocation5] sm:$0xff]  ;;  %v55_v0 = vld [vmem:[#allocation5 + $0x10] sm:$0xff]  ;;  %v52_v1 = vld [vmem:[#allocation2] sm:$0xff] }
  0x3b   :  { %159 = vmatprep.subr.mxu0 %v74_v41  ;;  %230 = vmatprep.subr.mxu1 %v76_v42  ;;  %v117_v6 = vld [vmem:[#allocation7] sm:$0xf] }
  0x3c   :  { %160 = vmatpush1.msra.mxu0 %v73_v43  ;;  %231 = vmatpush1.msra.mxu1 %v75_v44  ;;  %v122_v9 = vrot.slane %v117_v6, %v121_v4  ;;  %v130_v10 = vrot.slane %v117_v6, %v129_v5  ;;  %v126_v11 = vrot.slane %v117_v6, %v125_v7 }
  0x3d   :  { %161 = vmatprep.subr.mxu0 %v70_v45  ;;  %232 = vmatprep.subr.mxu1 %v72_v46  ;;  %v134_v12 = vrot.slane %v117_v6, %v133_v8 }
  0x3e   :  { %162 = vmatpush1.msra.mxu0 %v69_v47  ;;  %233 = vmatpush1.msra.mxu1 %v71_v48 }
  0x3f   :  { %163 = vmatprep.subr.mxu0 %v66_v49  ;;  %234 = vmatprep.subr.mxu1 %v68_v50 }
  0x40   :  { %164 = vmatpush1.msra.mxu0 %v65_v51  ;;  %235 = vmatpush1.msra.mxu1 %v67_v52 }
  0x41   :  { %165 = vmatprep.subr.mxu0 %v62_v53  ;;  %236 = vmatprep.subr.mxu1 %v64_v54 }
  0x42   :  { %166 = vmatpush1.msra.mxu0 %v61_v55  ;;  %237 = vmatpush1.msra.mxu1 %v63_v56 }
  0x43   :  { %167 = vmatprep.subr.mxu0 %v58_v57  ;;  %238 = vmatprep.subr.mxu1 %v60_v58 }
  0x44   :  { %168 = vmatpush1.msra.mxu0 %v57_v59  ;;  %239 = vmatpush1.msra.mxu1 %v59_v60 }
  0x45   :  { %169 = vmatprep.subr.mxu0 %v54_v61  ;;  %240 = vmatprep.subr.mxu1 %v56_v62 }
  0x46   :  { %170 = vmatpush1.msra.mxu0 %v53_v63  ;;  %241 = vmatpush1.msra.mxu1 %v55_v0 }
  0x47   :  { %204 = vmatmul.mubr.f32.vlgmr.msra.gmra.mxu0 %v52_v1  ;;  %275 = vmatmul.mubr.f32.vlgmr.msra.gmra.mxu1 %v52_v1 }
 0x107   :  { %v205_v13 = vpop.f32.mrf.mxu0  ;;  %v276_v14 = vpop.f32.mrf.mxu1 }
 0x108   :  { %v206_v15 = vadd.f32 %v205_v13, %v122_v9  ;;  %v277_v16 = vadd.f32 %v276_v14, %v130_v10 }
 0x109   :  { %v207_v17 = vpop.f32.mrf.mxu0  ;;  %v278_v18 = vpop.f32.mrf.mxu1 }
 0x10a   :  { %281 = vst [vmem:[#allocation8] sm:$0xff] %v206_v15  ;;  %283 = vst [vmem:[#allocation8 + $0x10] sm:$0xff] %v277_v16  ;;  %v208_v19 = vadd.f32 %v207_v17, %v126_v11  ;;  %v279_v20 = vadd.f32 %v278_v18, %v134_v12 }
 0x10c   :  { %282 = vst [vmem:[#allocation8 + $0x8] sm:$0xff] %v208_v19  ;;  %284 = vst [vmem:[#allocation8 + $0x18] sm:$0xff] %v279_v20 }
 0x10d   :  { %379 = shalt.err (!%p376_p5)
}
 0x10e   :  { %294 = dma.vmem_to_hbm [thread:$0]  %s292_s2, 512, %s436_s3, [#allocation4]  }
 0x10f   :  { %392 = dma.done.wait [#allocation4], 512  }
 0x110   :  { %393 = vsyncadd [#allocation4], 4294966784 }
 0x111   :  { %298 = vsyncpa [#allocation3], 1 }
 0x112   :  { %299 = vsyncpa [#allocation6], 1 }
 0x113   :  { %300 = vsyncpa [#allocation4], 1 }

</bundles_post_ra>
